<compile_context>
chip_gen: v6e
topology: v6e:2x2x1
jax: 0.10.0
libtpu: 0.0.40
codegen_flags: <defaults>
</compile_context>

<pallas_src>
import jax
import jax.numpy as jnp
from jax import lax
from jax.experimental import pallas as pl
from jax.experimental.pallas import tpu as pltpu


def _make_lstm_kernel(seq_len, batch_p, hidden):
    """Build the fused LSTM + classifier kernel for static (T, Bp, H)."""
    T, Bp, H = seq_len, batch_p, hidden
    G = 4 * H                       # 128: packed gate lanes [i | f | g | o]

    def kernel(x_ref, wih_ref, whh_ref, b_ref, wp_hbm_ref, bp_hbm_ref,
               out_ref, xp_ref, wp_ref, bp_ref, dma_sem):
        # (0) Classifier weights: start HBM->VMEM DMAs now, wait only right
        #     before step (3), so they overlap the projection + recurrence.
        wp_cp = pltpu.make_async_copy(wp_hbm_ref, wp_ref, dma_sem.at[0])
        bp_cp = pltpu.make_async_copy(bp_hbm_ref, bp_ref, dma_sem.at[1])
        wp_cp.start()
        bp_cp.start()

        # Lane-class constants (g-gate lanes are [2H, 3H)).  Built once, at the
        # exact shapes they are consumed at, so no broadcast_in_dim lands
        # inside the unrolled recurrence.
        lane1 = lax.broadcasted_iota(jnp.int32, (1, G), 1)
        g1 = (lane1 >= 2 * H) & (lane1 < 3 * H)
        pre = jnp.where(g1, 1.0, 0.5)                      # sigmoid pre-scale
        laneB = lax.broadcasted_iota(jnp.int32, (Bp, G), 1)
        gB = (laneB >= 2 * H) & (laneB < 3 * H)
        post_m = jnp.where(gB, 1.0, 0.5)                   # sigmoid post-affine
        post_a = jnp.where(gB, 0.0, 0.5)

        # (1) Hoisted input projection for ALL timesteps: one MXU matmul,
        #     (b_ih + b_hh) folded in.  The 0.5 sigmoid pre-scale for the
        #     i/f/o lanes is folded here and into whh (prologue, off the
        #     serial chain) so the loop's tanh argument is ready-made.
        xp_ref[...] = (jnp.dot(x_ref[...], wih_ref[...],
                               preferred_element_type=jnp.float32)
                       + b_ref[...]) * pre
        whh = whh_ref[...] * pre                           # (128, G), once

        # (2) Serial recurrence.  h/c are loop-carried (Bp, G) vregs; lanes
        #     >= H hold bounded garbage (|.| <= T) that the zero rows of
        #     whh / w_pred annihilate.  Per step: one 128-lane MXU matmul,
        #     2 EUP tanh passes, 3 XLU rolls, a handful of VPU ops.
        def step(t, carry):
            h, c = carry
            row0 = pl.multiple_of(t * Bp, Bp)
            gates = (xp_ref[pl.ds(row0, Bp), :]
                     + jnp.dot(h, whh, preferred_element_type=jnp.float32))
            th = jnp.tanh(gates)                 # one EUP pass for all 4 gates
            act = th * post_m + post_a           # sigmoid(i/f/o), tanh(g)
            # Align f/g/o with the [0, H) lanes holding h, c and gate i:
            # np.roll semantics -> roll by (G - k) moves lane k to lane 0.
            f_al = pltpu.roll(act, G - 1 * H, axis=1)
            g_al = pltpu.roll(act, G - 2 * H, axis=1)
            o_al = pltpu.roll(act, G - 3 * H, axis=1)
            c = f_al * c + act * g_al            # i-gate = act's own [0, H) lanes
            h = o_al * jnp.tanh(c)
            return h, c

        h0 = jnp.zeros((Bp, G), jnp.float32)
        c0 = jnp.zeros((Bp, G), jnp.float32)
        h_fin, _ = lax.fori_loop(0, T, step, (h0, c0), unroll=True)

        # (3) Fused classifier on the final hidden state; zero rows of wp kill
        #     the garbage lanes.  (Bp, 128) store is lane-dense (unmasked vst).
        wp_cp.wait()
        bp_cp.wait()
        out_ref[...] = (jnp.dot(h_fin, wp_ref[...],
                                preferred_element_type=jnp.float32)
                        + bp_ref[...])

    return kernel


def lstm_net_pallas(x_2d, w_ih_t, w_hh_t_p, bias, w_pred_t_p, b_pred_p,
                    *, seq_len, batch_p):
    """x_2d: (T*Bp, E) time-major flattened padded embeddings.
    Returns padded logits (Bp, OUT_P); caller slices to (B, 17)."""
    tbp, _ = x_2d.shape
    g4 = w_ih_t.shape[1]                 # 4*H = 128 packed gate lanes
    hc, n_out_p = w_pred_t_p.shape       # (128, 128)

    kernel = _make_lstm_kernel(seq_len, batch_p, g4 // 4)
    vmem = lambda: pl.BlockSpec(memory_space=pltpu.MemorySpace.VMEM)
    hbm = lambda: pl.BlockSpec(memory_space=pl.ANY)

    return pl.pallas_call(
        kernel,
        out_shape=jax.ShapeDtypeStruct((batch_p, n_out_p), jnp.float32),
        in_specs=[vmem(), vmem(), vmem(), vmem(), hbm(), hbm()],
        out_specs=vmem(),
        scratch_shapes=[
            pltpu.VMEM((tbp, g4), jnp.float32),        # pre-scaled x-projection
            pltpu.VMEM((hc, n_out_p), jnp.float32),    # classifier W landing buf
            pltpu.VMEM((1, n_out_p), jnp.float32),     # classifier b landing buf
            pltpu.SemaphoreType.DMA((2,)),
        ],
    )(x_2d, w_ih_t, w_hh_t_p, bias, w_pred_t_p, b_pred_p)


def lstm_net_ref(x_emb, w_ih_t, w_hh_t, bias, w_pred_t, b_pred):
    """Pure-JAX reference (time-major LSTM, PyTorch gate order), unpadded."""
    T, B, E = x_emb.shape
    H = w_hh_t.shape[0]
    hi = lax.Precision.HIGHEST

    def step(carry, x_t):
        h, c = carry
        gates = (jnp.dot(x_t, w_ih_t, precision=hi)
                 + jnp.dot(h, w_hh_t, precision=hi) + bias[0])
        i = jax.nn.sigmoid(gates[:, 0 * H:1 * H])
        f = jax.nn.sigmoid(gates[:, 1 * H:2 * H])
        g = jnp.tanh(gates[:, 2 * H:3 * H])
        o = jax.nn.sigmoid(gates[:, 3 * H:4 * H])
        c = f * c + i * g
        h = o * jnp.tanh(c)
        return (h, c), None

    h0 = jnp.zeros((B, H), jnp.float32)
    c0 = jnp.zeros((B, H), jnp.float32)
    (h_final, _), _ = lax.scan(step, (h0, c0), x_emb)
    return jnp.dot(h_final, w_pred_t, precision=hi) + b_pred[0]


if __name__ == "__main__":
    VOCAB = 50
    EMB = 32          # embedding_dim
    HID = 32          # hidden_size
    N_OUT = 17
    B = 2             # batch
    T = 8             # sequence length

    B_P = 8           # pad batch to the 8-sublane vreg height
    G = 4 * HID       # 128: packed gate lanes [i|f|g|o] -- no gate padding
    HC = 128          # W_hh / W_pred contraction rows (match the 128-lane h vreg)
    OUT_P = 128       # pad classifier output for a lane-dense store

    key = jax.random.PRNGKey(0)
    k_emb, k_ih, k_hh, k_bih, k_bhh, k_wp, k_bp, k_seq = jax.random.split(key, 8)

    bound = 1.0 / (HID ** 0.5)
    emb_table = jax.random.normal(k_emb, (VOCAB, EMB), jnp.float32)
    w_ih = jax.random.uniform(k_ih, (4 * HID, EMB), jnp.float32, -bound, bound)
    w_hh = jax.random.uniform(k_hh, (4 * HID, HID), jnp.float32, -bound, bound)
    b_ih = jax.random.uniform(k_bih, (4 * HID,), jnp.float32, -bound, bound)
    b_hh = jax.random.uniform(k_bhh, (4 * HID,), jnp.float32, -bound, bound)
    w_pred = jax.random.uniform(k_wp, (N_OUT, HID), jnp.float32, -bound, bound)
    b_pred = jax.random.uniform(k_bp, (N_OUT,), jnp.float32, -bound, bound)

    # ---- Packed-gate parameter prep (4*HID == 128, so no per-gate padding).
    w_ih_t = w_ih.T                                              # (E, 128)
    bias = (b_ih + b_hh).reshape(1, G)                           # (1, 128)
    # W_hh^T is (H, 128); pad contraction rows H -> 128 with zeros so the
    # garbage lanes (>= H) of the 128-lane h vreg contribute exactly 0.
    w_hh_t_p = jnp.pad(w_hh.T, ((0, HC - HID), (0, 0)))          # (128, 128)
    # Classifier: zero rows >= H kill garbage lanes; zero cols >= 17 keep the
    # 128-lane store dense; the wrapper slices back to (B, 17).
    w_pred_t_p = jnp.zeros((HC, OUT_P), jnp.float32).at[:HID, :N_OUT].set(w_pred.T)
    b_pred_p = jnp.zeros((1, OUT_P), jnp.float32).at[0, :N_OUT].set(b_pred)

    # ---- Tokens -> embeddings (gather in plain JAX), time-major, pad batch,
    # ---- flatten to (T*B_P, E) so the kernel's input projection is one 2-D
    # ---- MXU matmul.
    seq = jax.random.randint(k_seq, (B, T), 0, VOCAB, jnp.int32)   # (B, T)
    x_emb = emb_table[seq].astype(jnp.float32)                     # (B, T, E)
    x_tm = jnp.transpose(x_emb, (1, 0, 2))                         # (T, B, E)
    x_pad = jnp.pad(x_tm, ((0, 0), (0, B_P - B), (0, 0)))          # (T, Bp, E)
    x_2d = x_pad.reshape(T * B_P, EMB)                             # (T*Bp, E)

    preds_p = lstm_net_pallas(x_2d, w_ih_t, w_hh_t_p, bias,
                              w_pred_t_p, b_pred_p,
                              seq_len=T, batch_p=B_P)
    preds_p = jax.block_until_ready(preds_p)
    preds = preds_p[:B, :N_OUT]

    # ---- Pure-JAX reference on the unpadded parameters.
    ref = lstm_net_ref(x_tm,
                       w_ih.T, w_hh.T,
                       (b_ih + b_hh).reshape(1, 4 * HID),
                       w_pred.T, b_pred.reshape(1, N_OUT))

    assert preds.shape == (B, N_OUT)
    assert jnp.allclose(preds, ref, atol=5e-5, rtol=5e-5), "mismatch vs reference"

    print("KERNEL_OK")
</pallas_src>

<mosaic_0001>
module attributes {stable_mosaic.version = 11 : i64} {
  func.func @kernel(%arg0: memref<64x32xf32, #tpu.memory_space<vmem>>, %arg1: memref<32x128xf32, #tpu.memory_space<vmem>>, %arg2: memref<128x128xf32, #tpu.memory_space<vmem>>, %arg3: memref<1x128xf32, #tpu.memory_space<vmem>>, %arg4: memref<128x128xf32, #tpu.memory_space<any>>, %arg5: memref<1x128xf32, #tpu.memory_space<any>>, %arg6: memref<8x128xf32, #tpu.memory_space<vmem>>, %arg7: memref<64x128xf32, #tpu.memory_space<vmem>>, %arg8: memref<128x128xf32, #tpu.memory_space<vmem>>, %arg9: memref<1x128xf32, #tpu.memory_space<vmem>>, %arg10: memref<2x!tpu.dma_semaphore, #tpu.memory_space<semaphore_mem>>) attributes {dimension_semantics = [], scalar_prefetch = 0 : i64, scratch_operands = 4 : i64, tpu.core_type = #tpu.core_type<tc>} {
    %c0_i32 = arith.constant 0 : i32
    %0 = tpu.memref_slice %arg10[%c0_i32] : memref<2x!tpu.dma_semaphore, #tpu.memory_space<semaphore_mem>> -> memref<1x!tpu.dma_semaphore, #tpu.memory_space<semaphore_mem>>
    %1 = tpu.memref_squeeze %0 : memref<1x!tpu.dma_semaphore, #tpu.memory_space<semaphore_mem>> -> memref<!tpu.dma_semaphore, #tpu.memory_space<semaphore_mem>>
    tpu.enqueue_dma source(%arg4 : memref<128x128xf32, #tpu.memory_space<any>>) target(%arg8 : memref<128x128xf32, #tpu.memory_space<vmem>>) target_semaphore(%1 : memref<!tpu.dma_semaphore, #tpu.memory_space<semaphore_mem>>)
    %c1_i32 = arith.constant 1 : i32
    %2 = tpu.memref_slice %arg10[%c1_i32] : memref<2x!tpu.dma_semaphore, #tpu.memory_space<semaphore_mem>> -> memref<1x!tpu.dma_semaphore, #tpu.memory_space<semaphore_mem>>
    %3 = tpu.memref_squeeze %2 : memref<1x!tpu.dma_semaphore, #tpu.memory_space<semaphore_mem>> -> memref<!tpu.dma_semaphore, #tpu.memory_space<semaphore_mem>>
    tpu.enqueue_dma source(%arg5 : memref<1x128xf32, #tpu.memory_space<any>>) target(%arg9 : memref<1x128xf32, #tpu.memory_space<vmem>>) target_semaphore(%3 : memref<!tpu.dma_semaphore, #tpu.memory_space<semaphore_mem>>)
    %4 = tpu.iota {dimensions = array<i32: 1>} : vector<1x128xi32>
    %c64_i32 = arith.constant 64 : i32
    %5 = vector.broadcast %c64_i32 : i32 to vector<1x128xi32>
    %6 = arith.cmpi sge, %4, %5 : vector<1x128xi32>
    %c96_i32 = arith.constant 96 : i32
    %7 = vector.broadcast %c96_i32 : i32 to vector<1x128xi32>
    %8 = arith.cmpi slt, %4, %7 : vector<1x128xi32>
    %9 = arith.andi %6, %8 : vector<1x128xi1>
    %cst = arith.constant 1.000000e+00 : f32
    %cst_0 = arith.constant 5.000000e-01 : f32
    %10 = vector.broadcast %cst : f32 to vector<1x128xf32>
    %11 = vector.broadcast %cst_0 : f32 to vector<1x128xf32>
    %12 = arith.select %9, %10, %11 : vector<1x128xi1>, vector<1x128xf32>
    %13 = tpu.iota {dimensions = array<i32: 1>} : vector<8x128xi32>
    %c64_i32_1 = arith.constant 64 : i32
    %14 = vector.broadcast %c64_i32_1 : i32 to vector<8x128xi32>
    %15 = arith.cmpi sge, %13, %14 : vector<8x128xi32>
    %c96_i32_2 = arith.constant 96 : i32
    %16 = vector.broadcast %c96_i32_2 : i32 to vector<8x128xi32>
    %17 = arith.cmpi slt, %13, %16 : vector<8x128xi32>
    %18 = arith.andi %15, %17 : vector<8x128xi1>
    %cst_3 = arith.constant 1.000000e+00 : f32
    %cst_4 = arith.constant 5.000000e-01 : f32
    %19 = vector.broadcast %cst_3 : f32 to vector<8x128xf32>
    %20 = vector.broadcast %cst_4 : f32 to vector<8x128xf32>
    %21 = arith.select %18, %19, %20 : vector<8x128xi1>, vector<8x128xf32>
    %cst_5 = arith.constant 0.000000e+00 : f32
    %cst_6 = arith.constant 5.000000e-01 : f32
    %22 = vector.broadcast %cst_5 : f32 to vector<8x128xf32>
    %23 = vector.broadcast %cst_6 : f32 to vector<8x128xf32>
    %24 = arith.select %18, %22, %23 : vector<8x128xi1>, vector<8x128xf32>
    %c0 = arith.constant 0 : index
    %c0_7 = arith.constant 0 : index
    %25 = vector.load %arg0[%c0, %c0_7] : memref<64x32xf32, #tpu.memory_space<vmem>>, vector<64x32xf32>
    %c0_8 = arith.constant 0 : index
    %c0_9 = arith.constant 0 : index
    %26 = vector.load %arg1[%c0_8, %c0_9] : memref<32x128xf32, #tpu.memory_space<vmem>>, vector<32x128xf32>
    %cst_10 = arith.constant dense<0.000000e+00> : vector<64x128xf32>
    %27 = tpu.matmul %25, %26, %cst_10 {dimension_numbers = #tpu.dot_dimension_numbers<[1], [0], [0], [1], [0, 0, 1, 1], [], []>} : vector<64x32xf32>, vector<32x128xf32>, vector<64x128xf32> -> vector<64x128xf32>
    %c0_11 = arith.constant 0 : index
    %c0_12 = arith.constant 0 : index
    %28 = vector.load %arg3[%c0_11, %c0_12] : memref<1x128xf32, #tpu.memory_space<vmem>>, vector<1x128xf32>
    %29 = vector.broadcast %28 : vector<1x128xf32> to vector<64x128xf32>
    %30 = arith.addf %27, %29 : vector<64x128xf32>
    %31 = vector.broadcast %12 : vector<1x128xf32> to vector<64x128xf32>
    %32 = arith.mulf %30, %31 : vector<64x128xf32>
    %c0_13 = arith.constant 0 : index
    %c0_14 = arith.constant 0 : index
    %33 = vector.load %arg7[%c0_13, %c0_14] : memref<64x128xf32, #tpu.memory_space<vmem>>, vector<64x128xf32>
    tpu.vector_store %arg7[%c0_13, %c0_14], %32 {strides = array<i32>} : memref<64x128xf32, #tpu.memory_space<vmem>>, vector<64x128xf32>,
    %c0_15 = arith.constant 0 : index
    %c0_16 = arith.constant 0 : index
    %34 = vector.load %arg2[%c0_15, %c0_16] : memref<128x128xf32, #tpu.memory_space<vmem>>, vector<128x128xf32>
    %35 = vector.broadcast %12 : vector<1x128xf32> to vector<128x128xf32>
    %36 = arith.mulf %34, %35 : vector<128x128xf32>
    %cst_17 = arith.constant 0.000000e+00 : f32
    %37 = vector.broadcast %cst_17 : f32 to vector<8x128xf32>
    %cst_18 = arith.constant 0.000000e+00 : f32
    %38 = vector.broadcast %cst_18 : f32 to vector<8x128xf32>
    %c0_i32_19 = arith.constant 0 : i32
    %c8_i32 = arith.constant 8 : i32
    %39 = arith.muli %c0_i32_19, %c8_i32 : i32
    %40 = tpu.assume_multiple %39, 8 : i32
    %41 = arith.index_cast %40 : i32 to index
    %c0_20 = arith.constant 0 : index
    %42 = vector.load %arg7[%41, %c0_20] : memref<64x128xf32, #tpu.memory_space<vmem>>, vector<8x128xf32>
    %cst_21 = arith.constant dense<0.000000e+00> : vector<8x128xf32>
    %43 = tpu.matmul %37, %36, %cst_21 {dimension_numbers = #tpu.dot_dimension_numbers<[1], [0], [0], [1], [0, 0, 1, 1], [], []>} : vector<8x128xf32>, vector<128x128xf32>, vector<8x128xf32> -> vector<8x128xf32>
    %44 = arith.addf %42, %43 : vector<8x128xf32>
    %45 = math.tanh %44 : vector<8x128xf32>
    %46 = arith.mulf %45, %21 : vector<8x128xf32>
    %47 = arith.addf %46, %24 : vector<8x128xf32>
    %c96_i32_22 = arith.constant 96 : i32
    %48 = tpu.dynamic_rotate %47 by %c96_i32_22 dim 1 : vector<8x128xf32>, i32 -> vector<8x128xf32>
    %c64_i32_23 = arith.constant 64 : i32
    %49 = tpu.dynamic_rotate %47 by %c64_i32_23 dim 1 : vector<8x128xf32>, i32 -> vector<8x128xf32>
    %c32_i32 = arith.constant 32 : i32
    %50 = tpu.dynamic_rotate %47 by %c32_i32 dim 1 : vector<8x128xf32>, i32 -> vector<8x128xf32>
    %51 = arith.mulf %48, %38 : vector<8x128xf32>
    %52 = arith.mulf %47, %49 : vector<8x128xf32>
    %53 = arith.addf %51, %52 : vector<8x128xf32>
    %54 = math.tanh %53 : vector<8x128xf32>
    %55 = arith.mulf %50, %54 : vector<8x128xf32>
    %c1_i32_24 = arith.constant 1 : i32
    %c8_i32_25 = arith.constant 8 : i32
    %56 = arith.muli %c1_i32_24, %c8_i32_25 : i32
    %57 = tpu.assume_multiple %56, 8 : i32
    %58 = arith.index_cast %57 : i32 to index
    %c0_26 = arith.constant 0 : index
    %59 = vector.load %arg7[%58, %c0_26] : memref<64x128xf32, #tpu.memory_space<vmem>>, vector<8x128xf32>
    %cst_27 = arith.constant dense<0.000000e+00> : vector<8x128xf32>
    %60 = tpu.matmul %55, %36, %cst_27 {dimension_numbers = #tpu.dot_dimension_numbers<[1], [0], [0], [1], [0, 0, 1, 1], [], []>} : vector<8x128xf32>, vector<128x128xf32>, vector<8x128xf32> -> vector<8x128xf32>
    %61 = arith.addf %59, %60 : vector<8x128xf32>
    %62 = math.tanh %61 : vector<8x128xf32>
    %63 = arith.mulf %62, %21 : vector<8x128xf32>
    %64 = arith.addf %63, %24 : vector<8x128xf32>
    %c96_i32_28 = arith.constant 96 : i32
    %65 = tpu.dynamic_rotate %64 by %c96_i32_28 dim 1 : vector<8x128xf32>, i32 -> vector<8x128xf32>
    %c64_i32_29 = arith.constant 64 : i32
    %66 = tpu.dynamic_rotate %64 by %c64_i32_29 dim 1 : vector<8x128xf32>, i32 -> vector<8x128xf32>
    %c32_i32_30 = arith.constant 32 : i32
    %67 = tpu.dynamic_rotate %64 by %c32_i32_30 dim 1 : vector<8x128xf32>, i32 -> vector<8x128xf32>
    %68 = arith.mulf %65, %53 : vector<8x128xf32>
    %69 = arith.mulf %64, %66 : vector<8x128xf32>
    %70 = arith.addf %68, %69 : vector<8x128xf32>
    %71 = math.tanh %70 : vector<8x128xf32>
    %72 = arith.mulf %67, %71 : vector<8x128xf32>
    %c2_i32 = arith.constant 2 : i32
    %c8_i32_31 = arith.constant 8 : i32
    %73 = arith.muli %c2_i32, %c8_i32_31 : i32
    %74 = tpu.assume_multiple %73, 8 : i32
    %75 = arith.index_cast %74 : i32 to index
    %c0_32 = arith.constant 0 : index
    %76 = vector.load %arg7[%75, %c0_32] : memref<64x128xf32, #tpu.memory_space<vmem>>, vector<8x128xf32>
    %cst_33 = arith.constant dense<0.000000e+00> : vector<8x128xf32>
    %77 = tpu.matmul %72, %36, %cst_33 {dimension_numbers = #tpu.dot_dimension_numbers<[1], [0], [0], [1], [0, 0, 1, 1], [], []>} : vector<8x128xf32>, vector<128x128xf32>, vector<8x128xf32> -> vector<8x128xf32>
    %78 = arith.addf %76, %77 : vector<8x128xf32>
    %79 = math.tanh %78 : vector<8x128xf32>
    %80 = arith.mulf %79, %21 : vector<8x128xf32>
    %81 = arith.addf %80, %24 : vector<8x128xf32>
    %c96_i32_34 = arith.constant 96 : i32
    %82 = tpu.dynamic_rotate %81 by %c96_i32_34 dim 1 : vector<8x128xf32>, i32 -> vector<8x128xf32>
    %c64_i32_35 = arith.constant 64 : i32
    %83 = tpu.dynamic_rotate %81 by %c64_i32_35 dim 1 : vector<8x128xf32>, i32 -> vector<8x128xf32>
    %c32_i32_36 = arith.constant 32 : i32
    %84 = tpu.dynamic_rotate %81 by %c32_i32_36 dim 1 : vector<8x128xf32>, i32 -> vector<8x128xf32>
    %85 = arith.mulf %82, %70 : vector<8x128xf32>
    %86 = arith.mulf %81, %83 : vector<8x128xf32>
    %87 = arith.addf %85, %86 : vector<8x128xf32>
    %88 = math.tanh %87 : vector<8x128xf32>
    %89 = arith.mulf %84, %88 : vector<8x128xf32>
    %c3_i32 = arith.constant 3 : i32
    %c8_i32_37 = arith.constant 8 : i32
    %90 = arith.muli %c3_i32, %c8_i32_37 : i32
    %91 = tpu.assume_multiple %90, 8 : i32
    %92 = arith.index_cast %91 : i32 to index
    %c0_38 = arith.constant 0 : index
    %93 = vector.load %arg7[%92, %c0_38] : memref<64x128xf32, #tpu.memory_space<vmem>>, vector<8x128xf32>
    %cst_39 = arith.constant dense<0.000000e+00> : vector<8x128xf32>
    %94 = tpu.matmul %89, %36, %cst_39 {dimension_numbers = #tpu.dot_dimension_numbers<[1], [0], [0], [1], [0, 0, 1, 1], [], []>} : vector<8x128xf32>, vector<128x128xf32>, vector<8x128xf32> -> vector<8x128xf32>
    %95 = arith.addf %93, %94 : vector<8x128xf32>
    %96 = math.tanh %95 : vector<8x128xf32>
    %97 = arith.mulf %96, %21 : vector<8x128xf32>
    %98 = arith.addf %97, %24 : vector<8x128xf32>
    %c96_i32_40 = arith.constant 96 : i32
    %99 = tpu.dynamic_rotate %98 by %c96_i32_40 dim 1 : vector<8x128xf32>, i32 -> vector<8x128xf32>
    %c64_i32_41 = arith.constant 64 : i32
    %100 = tpu.dynamic_rotate %98 by %c64_i32_41 dim 1 : vector<8x128xf32>, i32 -> vector<8x128xf32>
    %c32_i32_42 = arith.constant 32 : i32
    %101 = tpu.dynamic_rotate %98 by %c32_i32_42 dim 1 : vector<8x128xf32>, i32 -> vector<8x128xf32>
    %102 = arith.mulf %99, %87 : vector<8x128xf32>
    %103 = arith.mulf %98, %100 : vector<8x128xf32>
    %104 = arith.addf %102, %103 : vector<8x128xf32>
    %105 = math.tanh %104 : vector<8x128xf32>
    %106 = arith.mulf %101, %105 : vector<8x128xf32>
    %c4_i32 = arith.constant 4 : i32
    %c8_i32_43 = arith.constant 8 : i32
    %107 = arith.muli %c4_i32, %c8_i32_43 : i32
    %108 = tpu.assume_multiple %107, 8 : i32
    %109 = arith.index_cast %108 : i32 to index
    %c0_44 = arith.constant 0 : index
    %110 = vector.load %arg7[%109, %c0_44] : memref<64x128xf32, #tpu.memory_space<vmem>>, vector<8x128xf32>
    %cst_45 = arith.constant dense<0.000000e+00> : vector<8x128xf32>
    %111 = tpu.matmul %106, %36, %cst_45 {dimension_numbers = #tpu.dot_dimension_numbers<[1], [0], [0], [1], [0, 0, 1, 1], [], []>} : vector<8x128xf32>, vector<128x128xf32>, vector<8x128xf32> -> vector<8x128xf32>
    %112 = arith.addf %110, %111 : vector<8x128xf32>
    %113 = math.tanh %112 : vector<8x128xf32>
    %114 = arith.mulf %113, %21 : vector<8x128xf32>
    %115 = arith.addf %114, %24 : vector<8x128xf32>
    %c96_i32_46 = arith.constant 96 : i32
    %116 = tpu.dynamic_rotate %115 by %c96_i32_46 dim 1 : vector<8x128xf32>, i32 -> vector<8x128xf32>
    %c64_i32_47 = arith.constant 64 : i32
    %117 = tpu.dynamic_rotate %115 by %c64_i32_47 dim 1 : vector<8x128xf32>, i32 -> vector<8x128xf32>
    %c32_i32_48 = arith.constant 32 : i32
    %118 = tpu.dynamic_rotate %115 by %c32_i32_48 dim 1 : vector<8x128xf32>, i32 -> vector<8x128xf32>
    %119 = arith.mulf %116, %104 : vector<8x128xf32>
    %120 = arith.mulf %115, %117 : vector<8x128xf32>
    %121 = arith.addf %119, %120 : vector<8x128xf32>
    %122 = math.tanh %121 : vector<8x128xf32>
    %123 = arith.mulf %118, %122 : vector<8x128xf32>
    %c5_i32 = arith.constant 5 : i32
    %c8_i32_49 = arith.constant 8 : i32
    %124 = arith.muli %c5_i32, %c8_i32_49 : i32
    %125 = tpu.assume_multiple %124, 8 : i32
    %126 = arith.index_cast %125 : i32 to index
    %c0_50 = arith.constant 0 : index
    %127 = vector.load %arg7[%126, %c0_50] : memref<64x128xf32, #tpu.memory_space<vmem>>, vector<8x128xf32>
    %cst_51 = arith.constant dense<0.000000e+00> : vector<8x128xf32>
    %128 = tpu.matmul %123, %36, %cst_51 {dimension_numbers = #tpu.dot_dimension_numbers<[1], [0], [0], [1], [0, 0, 1, 1], [], []>} : vector<8x128xf32>, vector<128x128xf32>, vector<8x128xf32> -> vector<8x128xf32>
    %129 = arith.addf %127, %128 : vector<8x128xf32>
    %130 = math.tanh %129 : vector<8x128xf32>
    %131 = arith.mulf %130, %21 : vector<8x128xf32>
    %132 = arith.addf %131, %24 : vector<8x128xf32>
    %c96_i32_52 = arith.constant 96 : i32
    %133 = tpu.dynamic_rotate %132 by %c96_i32_52 dim 1 : vector<8x128xf32>, i32 -> vector<8x128xf32>
    %c64_i32_53 = arith.constant 64 : i32
    %134 = tpu.dynamic_rotate %132 by %c64_i32_53 dim 1 : vector<8x128xf32>, i32 -> vector<8x128xf32>
    %c32_i32_54 = arith.constant 32 : i32
    %135 = tpu.dynamic_rotate %132 by %c32_i32_54 dim 1 : vector<8x128xf32>, i32 -> vector<8x128xf32>
    %136 = arith.mulf %133, %121 : vector<8x128xf32>
    %137 = arith.mulf %132, %134 : vector<8x128xf32>
    %138 = arith.addf %136, %137 : vector<8x128xf32>
    %139 = math.tanh %138 : vector<8x128xf32>
    %140 = arith.mulf %135, %139 : vector<8x128xf32>
    %c6_i32 = arith.constant 6 : i32
    %c8_i32_55 = arith.constant 8 : i32
    %141 = arith.muli %c6_i32, %c8_i32_55 : i32
    %142 = tpu.assume_multiple %141, 8 : i32
    %143 = arith.index_cast %142 : i32 to index
    %c0_56 = arith.constant 0 : index
    %144 = vector.load %arg7[%143, %c0_56] : memref<64x128xf32, #tpu.memory_space<vmem>>, vector<8x128xf32>
    %cst_57 = arith.constant dense<0.000000e+00> : vector<8x128xf32>
    %145 = tpu.matmul %140, %36, %cst_57 {dimension_numbers = #tpu.dot_dimension_numbers<[1], [0], [0], [1], [0, 0, 1, 1], [], []>} : vector<8x128xf32>, vector<128x128xf32>, vector<8x128xf32> -> vector<8x128xf32>
    %146 = arith.addf %144, %145 : vector<8x128xf32>
    %147 = math.tanh %146 : vector<8x128xf32>
    %148 = arith.mulf %147, %21 : vector<8x128xf32>
    %149 = arith.addf %148, %24 : vector<8x128xf32>
    %c96_i32_58 = arith.constant 96 : i32
    %150 = tpu.dynamic_rotate %149 by %c96_i32_58 dim 1 : vector<8x128xf32>, i32 -> vector<8x128xf32>
    %c64_i32_59 = arith.constant 64 : i32
    %151 = tpu.dynamic_rotate %149 by %c64_i32_59 dim 1 : vector<8x128xf32>, i32 -> vector<8x128xf32>
    %c32_i32_60 = arith.constant 32 : i32
    %152 = tpu.dynamic_rotate %149 by %c32_i32_60 dim 1 : vector<8x128xf32>, i32 -> vector<8x128xf32>
    %153 = arith.mulf %150, %138 : vector<8x128xf32>
    %154 = arith.mulf %149, %151 : vector<8x128xf32>
    %155 = arith.addf %153, %154 : vector<8x128xf32>
    %156 = math.tanh %155 : vector<8x128xf32>
    %157 = arith.mulf %152, %156 : vector<8x128xf32>
    %c7_i32 = arith.constant 7 : i32
    %c8_i32_61 = arith.constant 8 : i32
    %158 = arith.muli %c7_i32, %c8_i32_61 : i32
    %159 = tpu.assume_multiple %158, 8 : i32
    %160 = arith.index_cast %159 : i32 to index
    %c0_62 = arith.constant 0 : index
    %161 = vector.load %arg7[%160, %c0_62] : memref<64x128xf32, #tpu.memory_space<vmem>>, vector<8x128xf32>
    %cst_63 = arith.constant dense<0.000000e+00> : vector<8x128xf32>
    %162 = tpu.matmul %157, %36, %cst_63 {dimension_numbers = #tpu.dot_dimension_numbers<[1], [0], [0], [1], [0, 0, 1, 1], [], []>} : vector<8x128xf32>, vector<128x128xf32>, vector<8x128xf32> -> vector<8x128xf32>
    %163 = arith.addf %161, %162 : vector<8x128xf32>
    %164 = math.tanh %163 : vector<8x128xf32>
    %165 = arith.mulf %164, %21 : vector<8x128xf32>
    %166 = arith.addf %165, %24 : vector<8x128xf32>
    %c96_i32_64 = arith.constant 96 : i32
    %167 = tpu.dynamic_rotate %166 by %c96_i32_64 dim 1 : vector<8x128xf32>, i32 -> vector<8x128xf32>
    %c64_i32_65 = arith.constant 64 : i32
    %168 = tpu.dynamic_rotate %166 by %c64_i32_65 dim 1 : vector<8x128xf32>, i32 -> vector<8x128xf32>
    %c32_i32_66 = arith.constant 32 : i32
    %169 = tpu.dynamic_rotate %166 by %c32_i32_66 dim 1 : vector<8x128xf32>, i32 -> vector<8x128xf32>
    %170 = arith.mulf %167, %155 : vector<8x128xf32>
    %171 = arith.mulf %166, %168 : vector<8x128xf32>
    %172 = arith.addf %170, %171 : vector<8x128xf32>
    %173 = math.tanh %172 : vector<8x128xf32>
    %174 = arith.mulf %169, %173 : vector<8x128xf32>
    %c8_i32_67 = arith.constant 8 : i32
    %c0_i32_68 = arith.constant 0 : i32
    %175 = tpu.memref_slice %arg10[%c0_i32_68] : memref<2x!tpu.dma_semaphore, #tpu.memory_space<semaphore_mem>> -> memref<1x!tpu.dma_semaphore, #tpu.memory_space<semaphore_mem>>
    %176 = tpu.memref_squeeze %175 : memref<1x!tpu.dma_semaphore, #tpu.memory_space<semaphore_mem>> -> memref<!tpu.dma_semaphore, #tpu.memory_space<semaphore_mem>>
    tpu.wait_dma2 semaphore(%176 : memref<!tpu.dma_semaphore, #tpu.memory_space<semaphore_mem>>) src(%arg4 : memref<128x128xf32, #tpu.memory_space<any>>) dst(%arg8 : memref<128x128xf32, #tpu.memory_space<vmem>>)
    %c1_i32_69 = arith.constant 1 : i32
    %177 = tpu.memref_slice %arg10[%c1_i32_69] : memref<2x!tpu.dma_semaphore, #tpu.memory_space<semaphore_mem>> -> memref<1x!tpu.dma_semaphore, #tpu.memory_space<semaphore_mem>>
    %178 = tpu.memref_squeeze %177 : memref<1x!tpu.dma_semaphore, #tpu.memory_space<semaphore_mem>> -> memref<!tpu.dma_semaphore, #tpu.memory_space<semaphore_mem>>
    tpu.wait_dma2 semaphore(%178 : memref<!tpu.dma_semaphore, #tpu.memory_space<semaphore_mem>>) src(%arg5 : memref<1x128xf32, #tpu.memory_space<any>>) dst(%arg9 : memref<1x128xf32, #tpu.memory_space<vmem>>)
    %c0_70 = arith.constant 0 : index
    %c0_71 = arith.constant 0 : index
    %179 = vector.load %arg8[%c0_70, %c0_71] : memref<128x128xf32, #tpu.memory_space<vmem>>, vector<128x128xf32>
    %cst_72 = arith.constant dense<0.000000e+00> : vector<8x128xf32>
    %180 = tpu.matmul %174, %179, %cst_72 {dimension_numbers = #tpu.dot_dimension_numbers<[1], [0], [0], [1], [0, 0, 1, 1], [], []>} : vector<8x128xf32>, vector<128x128xf32>, vector<8x128xf32> -> vector<8x128xf32>
    %c0_73 = arith.constant 0 : index
    %c0_74 = arith.constant 0 : index
    %181 = vector.load %arg9[%c0_73, %c0_74] : memref<1x128xf32, #tpu.memory_space<vmem>>, vector<1x128xf32>
    %182 = vector.broadcast %181 : vector<1x128xf32> to vector<8x128xf32>
    %183 = arith.addf %180, %182 : vector<8x128xf32>
    %c0_75 = arith.constant 0 : index
    %c0_76 = arith.constant 0 : index
    %184 = vector.load %arg6[%c0_75, %c0_76] : memref<8x128xf32, #tpu.memory_space<vmem>>, vector<8x128xf32>
    tpu.vector_store %arg6[%c0_75, %c0_76], %183 {strides = array<i32>} : memref<8x128xf32, #tpu.memory_space<vmem>>, vector<8x128xf32>,
    return
  }
}

</mosaic_0001>

<bundles_post_ra>
// kernel: tpu_custom_call.1
= control target key start
LH: loop header
LB: loop body
LE: loop exit
PB: predicated region body
PF: predicated region fallthrough
CT: control target
= control target key end

     0   :  { %11 = vsyncpa [#allocation7], 0  ;;  %s2286_s0 = inlined_call_operand.vmem [shape: f32[64,32], index: 0, kind: input, shape index: {}]   ;;  %s2287_s1 = inlined_call_operand.vmem [shape: f32[32,128], index: 1, kind: input, shape index: {}]   ;;  %s2288_s2 = inlined_call_operand.hbm [shape: f32[128,128], index: 2, kind: input, shape index: {}]   ;;  %s2289_s3 = inlined_call_operand.vmem [shape: f32[1,128], index: 3, kind: input, shape index: {}]   ;;  %s2290_s4 = inlined_call_operand.hbm [shape: f32[128,128], index: 4, kind: input, shape index: {}]   ;;  %s2291_s5 = inlined_call_operand.vmem [shape: f32[1,128], index: 5, kind: input, shape index: {}]   ;;  %s2292_s6 = inlined_call_operand.hbm [shape: f32[8,128], index: 6, kind: output, shape index: {}]  }
   0x1   :  { %12 = vsyncpa [#allocation8], 0  ;;  %s1752_s21 = smov [#allocation6]  }
   0x2   :  { %s22_s22 = sshll.u32 %s1752_s21, 4  ;;  %s23_s22 = int_to_ptr.vmem [resolvable:$true] %s22_s22 }
   0x3   :  { %s1692_s23 = scalar_lea.vmem %s23_s22, 2048  ;;  %p1697_p1 = scmp.lt.s32.totalorder %s23_s22, %s23_s22 }
   0x4   :  { %p1693_p0 = scmp.ne.s32.totalorder %s23_s22, %s1692_s23  ;;  %p1698_p2 = scmp.lt.s32.totalorder %s1692_s23, %s1692_s23 }
   0x6   :  { %p1699_p3 = por %p1698_p2, %p1697_p1 }
   0x8   :  { %p1700_p4 = pnand %p1699_p3, %p1693_p0 }
   0xa   :  { %1703 = shalt.err (!%p1700_p4)
}
   0xb   :  { %s1753_s24 = smov 128   ;;  %s1754_s25 = smov 8  }
   0xc   :  { %28 = dma.hbm_to_vmem [thread:$0]  %s2288_s2, 2048, %s23_s22, [#allocation7], %s1753_s24, %s1753_s24, %s1754_s25  }
   0xd   :  { %1744 = dma.done.wait [#allocation7], 2048  }
   0xe   :  { %1745 = vsyncadd [#allocation7], 4294965248  ;;  %s1755_s28 = smov [#allocation3]  }
   0xf   :  { %s41_s29 = sshll.u32 %s1755_s28, 4  ;;  %s42_s29 = int_to_ptr.vmem [resolvable:$true] %s41_s29 }
  0x10   :  { %s1712_s30 = scalar_lea.vmem %s42_s29, 2048  ;;  %p1717_p6 = scmp.lt.s32.totalorder %s42_s29, %s42_s29 }
  0x11   :  { %p1713_p5 = scmp.ne.s32.totalorder %s42_s29, %s1712_s30  ;;  %p1718_p7 = scmp.lt.s32.totalorder %s1712_s30, %s1712_s30 }
  0x13   :  { %p1719_p8 = por %p1718_p7, %p1717_p6 }
  0x15   :  { %p1720_p9 = pnand %p1719_p8, %p1713_p5 }
  0x17   :  { %1723 = shalt.err (!%p1720_p9)  }
  0x18   :  { %44 = dma.hbm_to_vmem [thread:$0]  %s2290_s4, 2048, %s42_s29, [#allocation5]  ;;  %v64_v0 = vld [vmem:[%s2291_s5] sm:$0x1]  ;;  %v92_v1 = vlaneseq  ;;  %v1756_v2 = vmov 0.0  }
  0x19   :  { %65 = vst [vmem:[#allocation4] sm:$0x1] %v64_v0  ;;  %1326 = vmatprep.subr.mxu1 %v1756_v2 }
  0x1a   :  { %v93_v3 = vand.u32 127, %v92_v1 }
  0x1b   :  { %91 = vsyncadd [#allocation5 + $0x1], 16  ;;  %vm1757_vm0 = vmmov 0   ;;  %v110_v4 = vld [vmem:[%s2287_s1 + $0x18] sm:$0xff]  ;;  %v109_v5 = vld [vmem:[%s2287_s1 + $0x10] sm:$0xff]  ;;  %vm118_vm1 = vcmask 261120  }
  0x1c   :  { %1358 = vmatprep.mubr.msk.f32.mxu1 %vm1757_vm0, %v1756_v2  ;;  %vm94_vm2 = vcmp.ge.s32.totalorder %v93_v3, 64  ;;  %vm95_vm3 = vcmp.lt.s32.totalorder %v93_v3, 96  ;;  %v279_v6 = vld [vmem:[#allocation6 + $0x78] sm:$0xff]  ;;  %v278_v7 = vld [vmem:[#allocation6 + $0x70] sm:$0xff]  ;;  %1306 = vmatprep.subr.mxu0 %v110_v4  ;;  %v108_v9 = vld [vmem:[%s2287_s1 + $0x8] sm:$0xff]  ;;  %v1758_v11 = vmov 0.5  }
  0x1d   :  { %vm1816_vm4 = vmand %vm94_vm2, %vm95_vm3  ;;  %1307 = vmatpush3.msra.mxu0 %v110_v4  ;;  %v99_v10 = vld [vmem:[%s2286_s0] sm:$0xff]  ;;  %v277_v13 = vld [vmem:[#allocation6 + $0x68] sm:$0xff]  ;;  %s1759_s30 = smov 32   ;;  %s1760_s7 = smov 96  }
  0x1e   :  { %v1829_v12 = vsel %vm1816_vm4, 1.0, %v1758_v11  ;;  %1308 = vmatprep.subr.mxu0 %v109_v5  ;;  %1314 = vmatprep.mubr.msk.f32.mxu0 %vm118_vm1, %v99_v10  ;;  %v107_v16 = vld [vmem:[%s2287_s1] sm:$0xff]  ;;  %v100_v19 = vld [vmem:[%s2286_s0 + $0x8] sm:$0xff]  ;;  %v274_v22 = vld [vmem:[#allocation6 + $0x50] sm:$0xff]  ;;  %v1999_v54 = vsel %vm1816_vm4, 0.0, %v1758_v11  ;;  %s1761_s10 = smov 64  }
  0x1f   :  { %v1833_v14 = vmul.f32 %v279_v6, %v1829_v12  ;;  %v1836_v15 = vmul.f32 %v278_v7, %v1829_v12  ;;  %1309 = vmatpush3.msra.mxu0 %v109_v5  ;;  %v276_v17 = vld [vmem:[#allocation6 + $0x60] sm:$0xff]  ;;  %v1843_v18 = vmul.f32 %v277_v13, %v1829_v12  ;;  %v275_v20 = vld [vmem:[#allocation6 + $0x58] sm:$0xff]  ;;  %v273_v24 = vld [vmem:[#allocation6 + $0x48] sm:$0xff]  ;;  %v1864_v25 = vmul.f32 %v274_v22, %v1829_v12 }
  0x20   :  { %1310 = vmatprep.subr.mxu0 %v108_v9  ;;  %v1851_v21 = vmul.f32 %v276_v17, %v1829_v12  ;;  %v1857_v23 = vmul.f32 %v275_v20, %v1829_v12  ;;  %v272_v26 = vld [vmem:[#allocation6 + $0x40] sm:$0xff]  ;;  %v1871_v27 = vmul.f32 %v273_v24, %v1829_v12  ;;  %v271_v28 = vld [vmem:[#allocation6 + $0x38] sm:$0xff]  ;;  %v270_v30 = vld [vmem:[#allocation6 + $0x30] sm:$0xff] }
  0x21   :  { %1327 = vmatpush3.msra.mxu1 %v1833_v14  ;;  %1311 = vmatpush3.msra.mxu0 %v108_v9  ;;  %v1878_v29 = vmul.f32 %v272_v26, %v1829_v12  ;;  %v1885_v31 = vmul.f32 %v271_v28, %v1829_v12  ;;  %v269_v32 = vld [vmem:[#allocation6 + $0x28] sm:$0xff]  ;;  %v1892_v33 = vmul.f32 %v270_v30, %v1829_v12  ;;  %v268_v34 = vld [vmem:[#allocation6 + $0x20] sm:$0xff]  ;;  %v267_v36 = vld [vmem:[#allocation6 + $0x18] sm:$0xff] }
  0x22   :  { %1328 = vmatprep.subr.mxu1 %v1756_v2  ;;  %1312 = vmatprep.subr.mxu0 %v107_v16  ;;  %v1899_v35 = vmul.f32 %v269_v32, %v1829_v12  ;;  %v1906_v37 = vmul.f32 %v268_v34, %v1829_v12  ;;  %v266_v38 = vld [vmem:[#allocation6 + $0x10] sm:$0xff]  ;;  %v1913_v39 = vmul.f32 %v267_v36, %v1829_v12  ;;  %v265_v40 = vld [vmem:[#allocation6 + $0x8] sm:$0xff]  ;;  %v264_v42 = vld [vmem:[#allocation6] sm:$0xff] }
  0x23   :  { %1329 = vmatpush3.msra.mxu1 %v1836_v15  ;;  %1313 = vmatpush3.msra.mxu0 %v107_v16  ;;  %v1920_v41 = vmul.f32 %v266_v38, %v1829_v12  ;;  %v1927_v43 = vmul.f32 %v265_v40, %v1829_v12  ;;  %v1934_v44 = vmul.f32 %v264_v42, %v1829_v12  ;;  %v1992_v46 = vld [vmem:[%s2289_s3] ss:$0 sm:$0xff]  ;;  %v101_v55 = vld [vmem:[%s2286_s0 + $0x10] sm:$0xff]  ;;  %v102_v56 = vld [vmem:[%s2286_s0 + $0x18] sm:$0xff] }
  0x24   :  { %1330 = vmatprep.subr.mxu1 %v1756_v2  ;;  %1315 = vmatmul.mubr.msk.f32.vlgmr.msra.gmra.mxu0 %vm118_vm1, %v100_v19  ;;  %v103_v57 = vld [vmem:[%s2286_s0 + $0x20] sm:$0xff]  ;;  %v104_v60 = vld [vmem:[%s2286_s0 + $0x28] sm:$0xff]  ;;  %v105_v61 = vld [vmem:[%s2286_s0 + $0x30] sm:$0xff] }
  0x25   :  { %1331 = vmatpush3.msra.mxu1 %v1843_v18  ;;  %1361 = vmatprep.subr.mxu0 %v1756_v2  ;;  %v106_v62 = vld [vmem:[%s2286_s0 + $0x38] sm:$0xff] }
  0x26   :  { %1332 = vmatprep.subr.mxu1 %v1756_v2  ;;  %1362 = vmatpush3.msra.mxu0 %v1833_v14 }
  0x27   :  { %1333 = vmatpush3.msra.mxu1 %v1851_v21  ;;  %1363 = vmatprep.subr.mxu0 %v1756_v2 }
  0x28   :  { %1334 = vmatprep.subr.mxu1 %v1756_v2  ;;  %1364 = vmatpush3.msra.mxu0 %v1836_v15 }
  0x29   :  { %1335 = vmatpush3.msra.mxu1 %v1857_v23  ;;  %1365 = vmatprep.subr.mxu0 %v1756_v2 }
  0x2a   :  { %1336 = vmatprep.subr.mxu1 %v1756_v2  ;;  %1366 = vmatpush3.msra.mxu0 %v1843_v18 }
  0x2b   :  { %1337 = vmatpush3.msra.mxu1 %v1864_v25  ;;  %1367 = vmatprep.subr.mxu0 %v1756_v2 }
  0x2c   :  { %1338 = vmatprep.subr.mxu1 %v1756_v2  ;;  %1368 = vmatpush3.msra.mxu0 %v1851_v21 }
  0x2d   :  { %1339 = vmatpush3.msra.mxu1 %v1871_v27  ;;  %1369 = vmatprep.subr.mxu0 %v1756_v2 }
  0x2e   :  { %1340 = vmatprep.subr.mxu1 %v1756_v2  ;;  %1370 = vmatpush3.msra.mxu0 %v1857_v23 }
  0x2f   :  { %1341 = vmatpush3.msra.mxu1 %v1878_v29  ;;  %1371 = vmatprep.subr.mxu0 %v1756_v2 }
  0x30   :  { %1342 = vmatprep.subr.mxu1 %v1756_v2  ;;  %1372 = vmatpush3.msra.mxu0 %v1864_v25 }
  0x31   :  { %1343 = vmatpush3.msra.mxu1 %v1885_v31  ;;  %1373 = vmatprep.subr.mxu0 %v1756_v2 }
  0x32   :  { %1344 = vmatprep.subr.mxu1 %v1756_v2  ;;  %1374 = vmatpush3.msra.mxu0 %v1871_v27 }
  0x33   :  { %1345 = vmatpush3.msra.mxu1 %v1892_v33  ;;  %1375 = vmatprep.subr.mxu0 %v1756_v2 }
  0x34   :  { %1346 = vmatprep.subr.mxu1 %v1756_v2  ;;  %1376 = vmatpush3.msra.mxu0 %v1878_v29 }
  0x35   :  { %1347 = vmatpush3.msra.mxu1 %v1899_v35  ;;  %1377 = vmatprep.subr.mxu0 %v1756_v2 }
  0x36   :  { %1348 = vmatprep.subr.mxu1 %v1756_v2  ;;  %1378 = vmatpush3.msra.mxu0 %v1885_v31 }
  0x37   :  { %1349 = vmatpush3.msra.mxu1 %v1906_v37  ;;  %1379 = vmatprep.subr.mxu0 %v1756_v2 }
  0x38   :  { %1350 = vmatprep.subr.mxu1 %v1756_v2  ;;  %1380 = vmatpush3.msra.mxu0 %v1892_v33 }
  0x39   :  { %1351 = vmatpush3.msra.mxu1 %v1913_v39  ;;  %1381 = vmatprep.subr.mxu0 %v1756_v2 }
  0x3a   :  { %1352 = vmatprep.subr.mxu1 %v1756_v2  ;;  %1382 = vmatpush3.msra.mxu0 %v1899_v35 }
  0x3b   :  { %1353 = vmatpush3.msra.mxu1 %v1920_v41  ;;  %1383 = vmatprep.subr.mxu0 %v1756_v2 }
  0x3c   :  { %1354 = vmatprep.subr.mxu1 %v1756_v2  ;;  %1384 = vmatpush3.msra.mxu0 %v1906_v37 }
  0x3d   :  { %1355 = vmatpush3.msra.mxu1 %v1927_v43  ;;  %1385 = vmatprep.subr.mxu0 %v1756_v2 }
  0x3e   :  { %1356 = vmatprep.subr.mxu1 %v1756_v2  ;;  %1386 = vmatpush3.msra.mxu0 %v1913_v39 }
  0x3f   :  { %1357 = vmatpush3.msra.mxu1 %v1934_v44  ;;  %1387 = vmatprep.subr.mxu0 %v1756_v2 }
  0x40   :  { %1359 = vmatmul.mubr.f32.vlgmr.msra.gmra.mxu1 %v1756_v2  ;;  %1388 = vmatpush3.msra.mxu0 %v1920_v41 }
  0x41   :  { %1389 = vmatprep.subr.mxu0 %v1756_v2  ;;  %1396 = vmatprep.subr.mxu1 %v1756_v2 }
  0x42   :  { %1390 = vmatpush3.msra.mxu0 %v1927_v43  ;;  %1397 = vmatpush3.msra.mxu1 %v1833_v14 }
  0x43   :  { %1391 = vmatprep.subr.mxu0 %v1756_v2  ;;  %1398 = vmatprep.subr.mxu1 %v1756_v2 }
  0x44   :  { %1392 = vmatpush3.msra.mxu0 %v1934_v44  ;;  %1399 = vmatpush3.msra.mxu1 %v1836_v15 }
  0x45   :  { %1400 = vmatprep.subr.mxu1 %v1756_v2  ;;  %1428 = vmatprep.mubr.msk.f32.mxu1 %vm1757_vm0, %v1756_v2 }
  0x46   :  { %1401 = vmatpush3.msra.mxu1 %v1843_v18  ;;  %1431 = vmatprep.subr.mxu0 %v1756_v2 }
  0x47   :  { %1402 = vmatprep.subr.mxu1 %v1756_v2  ;;  %1317 = vmatprep.mubr.msk.f32.mxu0 %vm118_vm1, %v101_v55 }
  0x48   :  { %1403 = vmatpush3.msra.mxu1 %v1851_v21  ;;  %1318 = vmatmul.mubr.msk.f32.gmra.mxu0 %vm118_vm1, %v102_v56 }
  0x49   :  { %1404 = vmatprep.subr.mxu1 %v1756_v2  ;;  %1320 = vmatprep.mubr.msk.f32.mxu0 %vm118_vm1, %v103_v57 }
  0x4a   :  { %1405 = vmatpush3.msra.mxu1 %v1857_v23 }
  0x4b   :  { %1406 = vmatprep.subr.mxu1 %v1756_v2 }
  0x4c   :  { %1407 = vmatpush3.msra.mxu1 %v1864_v25  ;;  %1321 = vmatmul.mubr.msk.f32.gmra.mxu0 %vm118_vm1, %v104_v60 }
  0x4d   :  { %1408 = vmatprep.subr.mxu1 %v1756_v2  ;;  %1323 = vmatprep.mubr.msk.f32.mxu0 %vm118_vm1, %v105_v61 }
  0x4e   :  { %1409 = vmatpush3.msra.mxu1 %v1871_v27 }
  0x4f   :  { %1410 = vmatprep.subr.mxu1 %v1756_v2 }
  0x50   :  { %1411 = vmatpush3.msra.mxu1 %v1878_v29  ;;  %1324 = vmatmul.mubr.msk.f32.gmra.mxu0 %vm118_vm1, %v106_v62 }
  0x51   :  { %1412 = vmatprep.subr.mxu1 %v1756_v2  ;;  %1393 = vmatprep.mubr.msk.f32.mxu0 %vm1757_vm0, %v1756_v2 }
  0x52   :  { %1413 = vmatpush3.msra.mxu1 %v1885_v31 }
  0x53   :  { %1414 = vmatprep.subr.mxu1 %v1756_v2 }
  0x54   :  { %1415 = vmatpush3.msra.mxu1 %v1892_v33 }
  0x55   :  { %1416 = vmatprep.subr.mxu1 %v1756_v2 }
  0x56   :  { %1417 = vmatpush3.msra.mxu1 %v1899_v35 }
  0x57   :  { %1418 = vmatprep.subr.mxu1 %v1756_v2 }
  0x58   :  { %1419 = vmatpush3.msra.mxu1 %v1906_v37 }
  0x59   :  { %1420 = vmatprep.subr.mxu1 %v1756_v2 }
  0x5a   :  { %1421 = vmatpush3.msra.mxu1 %v1913_v39 }
  0x5b   :  { %1422 = vmatprep.subr.mxu1 %v1756_v2 }
  0x5c   :  { %1423 = vmatpush3.msra.mxu1 %v1920_v41 }
  0x5d   :  { %1424 = vmatprep.subr.mxu1 %v1756_v2 }
  0x5e   :  { %1425 = vmatpush3.msra.mxu1 %v1927_v43 }
  0x5f   :  { %1426 = vmatprep.subr.mxu1 %v1756_v2 }
  0x60   :  { %1427 = vmatpush3.msra.mxu1 %v1934_v44 }
  0x61   :  { %1466 = vmatprep.subr.mxu1 %v1756_v2 }
  0xe4   :  { %v1987_v45 = vpop.f32.mrf.mxu0 }
  0xe5   :  { %v215_v16 = vadd.f32 %v1987_v45, %v1992_v46 }
  0xe6   :  { %v209_v47 = vpop.f32.mrf.mxu0 }
  0xe7   :  { %v210_v48 = vadd.f32 %v1992_v46, %v209_v47  ;;  %v249_v19 = vmul.f32 %v215_v16, %v1829_v12 }
  0xe9   :  { %v248_v49 = vmul.f32 %v210_v48, %v1829_v12 }
 0x100   :  { %v363_v50 = vpop.f32.mrf.mxu1 }
 0x101   :  { %v367_v51 = vadd.f32 %v363_v50, %v248_v49 }
 0x102   :  { %v1360_v52 = vpop.f32.mrf.mxu1 }
 0x103   :  { %1652 = vtanh.f32 %v367_v51 }
 0x108   :  { %v2066_v8 = vpop.f32.mrf.mxu0 }
 0x10a   :  { %v219_v9 = vpop.f32.mrf.mxu0 }
 0x10b   :  { %v220_v48 = vadd.f32 %v1992_v46, %v219_v9 }
 0x10c   :  { %v2068_v10 = vpop.f32.mrf.mxu0 }
 0x10d   :  { %v250_v49 = vmul.f32 %v220_v48, %v1829_v12 }
 0x10e   :  { %v2070_v11 = vpop.f32.mrf.mxu0 }
 0x110   :  { %v1653_v53 = vpop.eup %1652  ;;  %v2072_v13 = vpop.f32.mrf.mxu0 }
 0x111   :  { %v369_v58 = vmul.f32 %v1653_v53, %v1829_v12 }
 0x112   :  { %v2076_v17 = vpop.f32.mrf.mxu0 }
 0x113   :  { %v370_v59 = vadd.f32 %v369_v58, %v1999_v54 }
 0x115   :  { %375 = vrot.lane.b32.xlu1 %v370_v59, %s1759_s30  ;;  %371 = vrot.lane.b32.xlu0 %v370_v59, %s1760_s7 }
 0x119   :  { %373 = vrot.lane.b32.xlu0 %v370_v59, %s1761_s10 }
 0x187   :  { %v372_v63 = vpop.permute.xlu0 %371  ;;  %v376_v6 = vpop.permute.xlu1 %375 }
 0x188   :  { %v377_v1 = vmul.f32 0.0, %v372_v63 }
 0x18b   :  { %v374_v0 = vpop.permute.xlu0 %373 }
 0x18c   :  { %v378_v3 = vmul.f32 %v374_v0, %v370_v59 }
 0x18e   :  { %v379_v4 = vadd.f32 %v378_v3, %v377_v1  ;;  %v225_v1 = vadd.f32 %v2066_v8, %v1992_v46 }
 0x190   :  { %1654 = vtanh.f32 %v379_v4  ;;  %v251_v3 = vmul.f32 %v225_v1, %v1829_v12 }
 0x19d   :  { %v1655_v5 = vpop.eup %1654 }
 0x19e   :  { %v381_v7 = vmul.f32 %v1655_v5, %v376_v6 }
 0x1a0   :  { %1394 = vmatmul.mubr.f32.vlgmr.msra.gmra.mxu0 %v381_v7 }
 0x1a1   :  { %1432 = vmatpush3.msra.mxu0 %v1833_v14  ;;  %1463 = vmatprep.mubr.msk.f32.mxu0 %vm1757_vm0, %v1756_v2 }
 0x1a2   :  { %1433 = vmatprep.subr.mxu0 %v1756_v2 }
 0x1a3   :  { %1434 = vmatpush3.msra.mxu0 %v1836_v15 }
 0x1a4   :  { %1435 = vmatprep.subr.mxu0 %v1756_v2 }
 0x1a5   :  { %1436 = vmatpush3.msra.mxu0 %v1843_v18 }
 0x1a6   :  { %1437 = vmatprep.subr.mxu0 %v1756_v2 }
 0x1a7   :  { %1438 = vmatpush3.msra.mxu0 %v1851_v21 }
 0x1a8   :  { %1439 = vmatprep.subr.mxu0 %v1756_v2 }
 0x1a9   :  { %1440 = vmatpush3.msra.mxu0 %v1857_v23 }
 0x1aa   :  { %1441 = vmatprep.subr.mxu0 %v1756_v2 }
 0x1ab   :  { %1442 = vmatpush3.msra.mxu0 %v1864_v25 }
 0x1ac   :  { %1443 = vmatprep.subr.mxu0 %v1756_v2 }
 0x1ad   :  { %1444 = vmatpush3.msra.mxu0 %v1871_v27 }
 0x1ae   :  { %1445 = vmatprep.subr.mxu0 %v1756_v2 }
 0x1af   :  { %1446 = vmatpush3.msra.mxu0 %v1878_v29 }
 0x1b0   :  { %1447 = vmatprep.subr.mxu0 %v1756_v2 }
 0x1b1   :  { %1448 = vmatpush3.msra.mxu0 %v1885_v31 }
 0x1b2   :  { %1449 = vmatprep.subr.mxu0 %v1756_v2 }
 0x1b3   :  { %1450 = vmatpush3.msra.mxu0 %v1892_v33 }
 0x1b4   :  { %1451 = vmatprep.subr.mxu0 %v1756_v2 }
 0x1b5   :  { %1452 = vmatpush3.msra.mxu0 %v1899_v35 }
 0x1b6   :  { %1453 = vmatprep.subr.mxu0 %v1756_v2 }
 0x1b7   :  { %1454 = vmatpush3.msra.mxu0 %v1906_v37 }
 0x1b8   :  { %1455 = vmatprep.subr.mxu0 %v1756_v2 }
 0x1b9   :  { %1456 = vmatpush3.msra.mxu0 %v1913_v39 }
 0x1ba   :  { %1457 = vmatprep.subr.mxu0 %v1756_v2 }
 0x1bb   :  { %1458 = vmatpush3.msra.mxu0 %v1920_v41 }
 0x1bc   :  { %1459 = vmatprep.subr.mxu0 %v1756_v2 }
 0x1bd   :  { %1460 = vmatpush3.msra.mxu0 %v1927_v43 }
 0x1be   :  { %1461 = vmatprep.subr.mxu0 %v1756_v2 }
 0x1bf   :  { %1462 = vmatpush3.msra.mxu0 %v1934_v44 }
 0x1c0   :  { %1501 = vmatprep.subr.mxu0 %v1756_v2 }
 0x260   :  { %v450_v20 = vpop.f32.mrf.mxu0 }
 0x261   :  { %v454_v22 = vadd.f32 %v450_v20, %v249_v19 }
 0x262   :  { %v1395_v24 = vpop.f32.mrf.mxu0 }
 0x263   :  { %1656 = vtanh.f32 %v454_v22 }
 0x270   :  { %v1657_v26 = vpop.eup %1656 }
 0x271   :  { %v456_v28 = vmul.f32 %v1657_v26, %v1829_v12 }
 0x273   :  { %v457_v30 = vadd.f32 %v456_v28, %v1999_v54 }
 0x275   :  { %460 = vrot.lane.b32.xlu0 %v457_v30, %s1761_s10  ;;  %458 = vrot.lane.b32.xlu1 %v457_v30, %s1760_s7 }
 0x279   :  { %462 = vrot.lane.b32.xlu1 %v457_v30, %s1759_s30 }
 0x2e7   :  { %v461_v32 = vpop.permute.xlu0 %460  ;;  %v459_v34 = vpop.permute.xlu1 %458 }
 0x2e8   :  { %v465_v36 = vmul.f32 %v461_v32, %v457_v30  ;;  %v464_v38 = vmul.f32 %v459_v34, %v379_v4  ;;  %v230_v32 = vadd.f32 %v1992_v46, %v2070_v11 }
 0x2ea   :  { %v466_v40 = vadd.f32 %v465_v36, %v464_v38  ;;  %v252_v34 = vmul.f32 %v230_v32, %v1829_v12 }
 0x2eb   :  { %v463_v45 = vpop.permute.xlu1 %462 }
 0x2ec   :  { %1658 = vtanh.f32 %v466_v40 }
 0x2f9   :  { %v1659_v42 = vpop.eup %1658 }
 0x2fa   :  { %v468_v47 = vmul.f32 %v1659_v42, %v463_v45 }
 0x2fc   :  { %1429 = vmatmul.mubr.f32.vlgmr.msra.gmra.mxu1 %v468_v47 }
 0x2fd   :  { %1467 = vmatpush3.msra.mxu1 %v1833_v14  ;;  %1498 = vmatprep.mubr.msk.f32.mxu1 %vm1757_vm0, %v1756_v2 }
 0x2fe   :  { %1468 = vmatprep.subr.mxu1 %v1756_v2 }
 0x2ff   :  { %1469 = vmatpush3.msra.mxu1 %v1836_v15 }
 0x300   :  { %1470 = vmatprep.subr.mxu1 %v1756_v2 }
 0x301   :  { %1471 = vmatpush3.msra.mxu1 %v1843_v18 }
 0x302   :  { %1472 = vmatprep.subr.mxu1 %v1756_v2 }
 0x303   :  { %1473 = vmatpush3.msra.mxu1 %v1851_v21 }
 0x304   :  { %1474 = vmatprep.subr.mxu1 %v1756_v2 }
 0x305   :  { %1475 = vmatpush3.msra.mxu1 %v1857_v23 }
 0x306   :  { %1476 = vmatprep.subr.mxu1 %v1756_v2 }
 0x307   :  { %1477 = vmatpush3.msra.mxu1 %v1864_v25 }
 0x308   :  { %1478 = vmatprep.subr.mxu1 %v1756_v2 }
 0x309   :  { %1479 = vmatpush3.msra.mxu1 %v1871_v27 }
 0x30a   :  { %1480 = vmatprep.subr.mxu1 %v1756_v2 }
 0x30b   :  { %1481 = vmatpush3.msra.mxu1 %v1878_v29 }
 0x30c   :  { %1482 = vmatprep.subr.mxu1 %v1756_v2 }
 0x30d   :  { %1483 = vmatpush3.msra.mxu1 %v1885_v31 }
 0x30e   :  { %1484 = vmatprep.subr.mxu1 %v1756_v2 }
 0x30f   :  { %1485 = vmatpush3.msra.mxu1 %v1892_v33 }
 0x310   :  { %1486 = vmatprep.subr.mxu1 %v1756_v2 }
 0x311   :  { %1487 = vmatpush3.msra.mxu1 %v1899_v35 }
 0x312   :  { %1488 = vmatprep.subr.mxu1 %v1756_v2 }
 0x313   :  { %1489 = vmatpush3.msra.mxu1 %v1906_v37 }
 0x314   :  { %1490 = vmatprep.subr.mxu1 %v1756_v2 }
 0x315   :  { %1491 = vmatpush3.msra.mxu1 %v1913_v39 }
 0x316   :  { %1492 = vmatprep.subr.mxu1 %v1756_v2 }
 0x317   :  { %1493 = vmatpush3.msra.mxu1 %v1920_v41 }
 0x318   :  { %1494 = vmatprep.subr.mxu1 %v1756_v2 }
 0x319   :  { %1495 = vmatpush3.msra.mxu1 %v1927_v43 }
 0x31a   :  { %1496 = vmatprep.subr.mxu1 %v1756_v2 }
 0x31b   :  { %1497 = vmatpush3.msra.mxu1 %v1934_v44 }
 0x31c   :  { %1536 = vmatprep.subr.mxu1 %v1756_v2 }
 0x3bc   :  { %v537_v50 = vpop.f32.mrf.mxu1 }
 0x3bd   :  { %v541_v51 = vadd.f32 %v537_v50, %v250_v49 }
 0x3be   :  { %v1430_v52 = vpop.f32.mrf.mxu1 }
 0x3bf   :  { %1660 = vtanh.f32 %v541_v51 }
 0x3cc   :  { %v1661_v53 = vpop.eup %1660 }
 0x3cd   :  { %v543_v55 = vmul.f32 %v1661_v53, %v1829_v12 }
 0x3cf   :  { %v544_v56 = vadd.f32 %v543_v55, %v1999_v54 }
 0x3d1   :  { %547 = vrot.lane.b32.xlu1 %v544_v56, %s1761_s10  ;;  %545 = vrot.lane.b32.xlu0 %v544_v56, %s1760_s7 }
 0x3d5   :  { %549 = vrot.lane.b32.xlu0 %v544_v56, %s1759_s30 }
 0x443   :  { %v548_v57 = vpop.permute.xlu1 %547  ;;  %v546_v58 = vpop.permute.xlu0 %545 }
 0x444   :  { %v552_v59 = vmul.f32 %v548_v57, %v544_v56  ;;  %v551_v60 = vmul.f32 %v546_v58, %v466_v40 }
 0x446   :  { %v553_v61 = vadd.f32 %v552_v59, %v551_v60 }
 0x447   :  { %v550_v63 = vpop.permute.xlu0 %549 }
 0x448   :  { %1662 = vtanh.f32 %v553_v61 }
 0x455   :  { %v1663_v62 = vpop.eup %1662 }
 0x456   :  { %v555_v0 = vmul.f32 %v1663_v62, %v550_v63 }
 0x458   :  { %1464 = vmatmul.mubr.f32.vlgmr.msra.gmra.mxu0 %v555_v0 }
 0x459   :  { %1502 = vmatpush3.msra.mxu0 %v1833_v14  ;;  %1533 = vmatprep.mubr.msk.f32.mxu0 %vm1757_vm0, %v1756_v2 }
 0x45a   :  { %1503 = vmatprep.subr.mxu0 %v1756_v2 }
 0x45b   :  { %1504 = vmatpush3.msra.mxu0 %v1836_v15 }
 0x45c   :  { %1505 = vmatprep.subr.mxu0 %v1756_v2 }
 0x45d   :  { %1506 = vmatpush3.msra.mxu0 %v1843_v18 }
 0x45e   :  { %1507 = vmatprep.subr.mxu0 %v1756_v2 }
 0x45f   :  { %1508 = vmatpush3.msra.mxu0 %v1851_v21 }
 0x460   :  { %1509 = vmatprep.subr.mxu0 %v1756_v2 }
 0x461   :  { %1510 = vmatpush3.msra.mxu0 %v1857_v23 }
 0x462   :  { %1511 = vmatprep.subr.mxu0 %v1756_v2 }
 0x463   :  { %1512 = vmatpush3.msra.mxu0 %v1864_v25 }
 0x464   :  { %1513 = vmatprep.subr.mxu0 %v1756_v2 }
 0x465   :  { %1514 = vmatpush3.msra.mxu0 %v1871_v27 }
 0x466   :  { %1515 = vmatprep.subr.mxu0 %v1756_v2 }
 0x467   :  { %1516 = vmatpush3.msra.mxu0 %v1878_v29 }
 0x468   :  { %1517 = vmatprep.subr.mxu0 %v1756_v2 }
 0x469   :  { %1518 = vmatpush3.msra.mxu0 %v1885_v31 }
 0x46a   :  { %1519 = vmatprep.subr.mxu0 %v1756_v2 }
 0x46b   :  { %1520 = vmatpush3.msra.mxu0 %v1892_v33 }
 0x46c   :  { %1521 = vmatprep.subr.mxu0 %v1756_v2 }
 0x46d   :  { %1522 = vmatpush3.msra.mxu0 %v1899_v35 }
 0x46e   :  { %1523 = vmatprep.subr.mxu0 %v1756_v2 }
 0x46f   :  { %1524 = vmatpush3.msra.mxu0 %v1906_v37 }
 0x470   :  { %1525 = vmatprep.subr.mxu0 %v1756_v2 }
 0x471   :  { %1526 = vmatpush3.msra.mxu0 %v1913_v39 }
 0x472   :  { %1527 = vmatprep.subr.mxu0 %v1756_v2 }
 0x473   :  { %1528 = vmatpush3.msra.mxu0 %v1920_v41 }
 0x474   :  { %1529 = vmatprep.subr.mxu0 %v1756_v2 }
 0x475   :  { %1530 = vmatpush3.msra.mxu0 %v1927_v43 }
 0x476   :  { %1531 = vmatprep.subr.mxu0 %v1756_v2 }
 0x477   :  { %1532 = vmatpush3.msra.mxu0 %v1934_v44 }
 0x478   :  { %1571 = vmatprep.subr.mxu0 %v1756_v2 }
 0x518   :  { %v624_v4 = vpop.f32.mrf.mxu0 }
 0x519   :  { %v628_v5 = vadd.f32 %v624_v4, %v251_v3 }
 0x51a   :  { %v1465_v6 = vpop.f32.mrf.mxu0 }
 0x51b   :  { %1664 = vtanh.f32 %v628_v5 }
 0x528   :  { %v1665_v7 = vpop.eup %1664 }
 0x529   :  { %v630_v9 = vmul.f32 %v1665_v7, %v1829_v12  ;;  %v245_v7 = vadd.f32 %v2072_v13, %v1992_v46 }
 0x52b   :  { %v631_v16 = vadd.f32 %v630_v9, %v1999_v54  ;;  %v255_v9 = vmul.f32 %v245_v7, %v1829_v12 }
 0x52d   :  { %634 = vrot.lane.b32.xlu0 %v631_v16, %s1761_s10  ;;  %632 = vrot.lane.b32.xlu1 %v631_v16, %s1760_s7 }
 0x531   :  { %636 = vrot.lane.b32.xlu1 %v631_v16, %s1759_s30 }
 0x59f   :  { %v635_v19 = vpop.permute.xlu0 %634  ;;  %v633_v20 = vpop.permute.xlu1 %632 }
 0x5a0   :  { %v639_v8 = vmul.f32 %v635_v19, %v631_v16  ;;  %v638_v22 = vmul.f32 %v633_v20, %v553_v61 }
 0x5a2   :  { %v640_v24 = vadd.f32 %v639_v8, %v638_v22 }
 0x5a3   :  { %v637_v28 = vpop.permute.xlu1 %636 }
 0x5a4   :  { %1666 = vtanh.f32 %v640_v24 }
 0x5b1   :  { %v1667_v26 = vpop.eup %1666 }
 0x5b2   :  { %v642_v30 = vmul.f32 %v1667_v26, %v637_v28 }
 0x5b4   :  { %1499 = vmatmul.mubr.f32.vlgmr.msra.gmra.mxu1 %v642_v30 }
 0x5b5   :  { %1537 = vmatpush3.msra.mxu1 %v1833_v14  ;;  %1568 = vmatprep.mubr.msk.f32.mxu1 %vm1757_vm0, %v1756_v2 }
 0x5b6   :  { %1538 = vmatprep.subr.mxu1 %v1756_v2 }
 0x5b7   :  { %1539 = vmatpush3.msra.mxu1 %v1836_v15 }
 0x5b8   :  { %1540 = vmatprep.subr.mxu1 %v1756_v2 }
 0x5b9   :  { %1541 = vmatpush3.msra.mxu1 %v1843_v18 }
 0x5ba   :  { %1542 = vmatprep.subr.mxu1 %v1756_v2 }
 0x5bb   :  { %1543 = vmatpush3.msra.mxu1 %v1851_v21 }
 0x5bc   :  { %1544 = vmatprep.subr.mxu1 %v1756_v2 }
 0x5bd   :  { %1545 = vmatpush3.msra.mxu1 %v1857_v23 }
 0x5be   :  { %1546 = vmatprep.subr.mxu1 %v1756_v2 }
 0x5bf   :  { %1547 = vmatpush3.msra.mxu1 %v1864_v25 }
 0x5c0   :  { %1548 = vmatprep.subr.mxu1 %v1756_v2 }
 0x5c1   :  { %1549 = vmatpush3.msra.mxu1 %v1871_v27 }
 0x5c2   :  { %1550 = vmatprep.subr.mxu1 %v1756_v2 }
 0x5c3   :  { %1551 = vmatpush3.msra.mxu1 %v1878_v29 }
 0x5c4   :  { %1552 = vmatprep.subr.mxu1 %v1756_v2 }
 0x5c5   :  { %1553 = vmatpush3.msra.mxu1 %v1885_v31 }
 0x5c6   :  { %1554 = vmatprep.subr.mxu1 %v1756_v2 }
 0x5c7   :  { %1555 = vmatpush3.msra.mxu1 %v1892_v33 }
 0x5c8   :  { %1556 = vmatprep.subr.mxu1 %v1756_v2 }
 0x5c9   :  { %1557 = vmatpush3.msra.mxu1 %v1899_v35 }
 0x5ca   :  { %1558 = vmatprep.subr.mxu1 %v1756_v2 }
 0x5cb   :  { %1559 = vmatpush3.msra.mxu1 %v1906_v37 }
 0x5cc   :  { %1560 = vmatprep.subr.mxu1 %v1756_v2 }
 0x5cd   :  { %1561 = vmatpush3.msra.mxu1 %v1913_v39 }
 0x5ce   :  { %1562 = vmatprep.subr.mxu1 %v1756_v2 }
 0x5cf   :  { %1563 = vmatpush3.msra.mxu1 %v1920_v41 }
 0x5d0   :  { %1564 = vmatprep.subr.mxu1 %v1756_v2 }
 0x5d1   :  { %1565 = vmatpush3.msra.mxu1 %v1927_v43 }
 0x5d2   :  { %1566 = vmatprep.subr.mxu1 %v1756_v2 }
 0x5d3   :  { %1567 = vmatpush3.msra.mxu1 %v1934_v44 }
 0x674   :  { %v711_v36 = vpop.f32.mrf.mxu1 }
 0x675   :  { %v715_v38 = vadd.f32 %v711_v36, %v252_v34 }
 0x676   :  { %v1500_v40 = vpop.f32.mrf.mxu1 }
 0x677   :  { %1668 = vtanh.f32 %v715_v38 }
 0x684   :  { %v1669_v42 = vpop.eup %1668 }
 0x685   :  { %v717_v45 = vmul.f32 %v1669_v42, %v1829_v12 }
 0x687   :  { %v718_v47 = vadd.f32 %v717_v45, %v1999_v54 }
 0x689   :  { %721 = vrot.lane.b32.xlu1 %v718_v47, %s1761_s10  ;;  %719 = vrot.lane.b32.xlu0 %v718_v47, %s1760_s7 }
 0x68d   :  { %723 = vrot.lane.b32.xlu0 %v718_v47, %s1759_s30 }
 0x6fb   :  { %v722_v48 = vpop.permute.xlu1 %721  ;;  %v720_v49 = vpop.permute.xlu0 %719 }
 0x6fc   :  { %v726_v11 = vmul.f32 %v722_v48, %v718_v47  ;;  %v725_v50 = vmul.f32 %v720_v49, %v640_v24 }
 0x6fe   :  { %v727_v51 = vadd.f32 %v726_v11, %v725_v50 }
 0x6ff   :  { %v724_v53 = vpop.permute.xlu0 %723 }
 0x700   :  { %1670 = vtanh.f32 %v727_v51 }
 0x70d   :  { %v1671_v52 = vpop.eup %1670 }
 0x70e   :  { %v729_v55 = vmul.f32 %v1671_v52, %v724_v53 }
 0x710   :  { %1534 = vmatmul.mubr.f32.vlgmr.msra.gmra.mxu0 %v729_v55 }
 0x711   :  { %1572 = vmatpush3.msra.mxu0 %v1833_v14  ;;  %1603 = vmatprep.mubr.msk.f32.mxu0 %vm1757_vm0, %v1756_v2  ;;  %v235_v14 = vadd.f32 %v2068_v10, %v1992_v46  ;;  %v240_v10 = vadd.f32 %v1992_v46, %v2076_v17 }
 0x712   :  { %1573 = vmatprep.subr.mxu0 %v1756_v2 }
 0x713   :  { %1574 = vmatpush3.msra.mxu0 %v1836_v15  ;;  %v253_v15 = vmul.f32 %v235_v14, %v1829_v12  ;;  %v254_v56 = vmul.f32 %v240_v10, %v1829_v12 }
 0x714   :  { %1575 = vmatprep.subr.mxu0 %v1756_v2 }
 0x715   :  { %1576 = vmatpush3.msra.mxu0 %v1843_v18 }
 0x716   :  { %1577 = vmatprep.subr.mxu0 %v1756_v2 }
 0x717   :  { %1578 = vmatpush3.msra.mxu0 %v1851_v21 }
 0x718   :  { %1579 = vmatprep.subr.mxu0 %v1756_v2 }
 0x719   :  { %1580 = vmatpush3.msra.mxu0 %v1857_v23 }
 0x71a   :  { %1581 = vmatprep.subr.mxu0 %v1756_v2 }
 0x71b   :  { %1582 = vmatpush3.msra.mxu0 %v1864_v25 }
 0x71c   :  { %1583 = vmatprep.subr.mxu0 %v1756_v2 }
 0x71d   :  { %1584 = vmatpush3.msra.mxu0 %v1871_v27 }
 0x71e   :  { %1585 = vmatprep.subr.mxu0 %v1756_v2 }
 0x71f   :  { %1586 = vmatpush3.msra.mxu0 %v1878_v29 }
 0x720   :  { %1587 = vmatprep.subr.mxu0 %v1756_v2 }
 0x721   :  { %1588 = vmatpush3.msra.mxu0 %v1885_v31 }
 0x722   :  { %1589 = vmatprep.subr.mxu0 %v1756_v2 }
 0x723   :  { %1590 = vmatpush3.msra.mxu0 %v1892_v33 }
 0x724   :  { %1591 = vmatprep.subr.mxu0 %v1756_v2 }
 0x725   :  { %1592 = vmatpush3.msra.mxu0 %v1899_v35 }
 0x726   :  { %1593 = vmatprep.subr.mxu0 %v1756_v2 }
 0x727   :  { %1594 = vmatpush3.msra.mxu0 %v1906_v37 }
 0x728   :  { %1595 = vmatprep.subr.mxu0 %v1756_v2 }
 0x729   :  { %1596 = vmatpush3.msra.mxu0 %v1913_v39 }
 0x72a   :  { %1597 = vmatprep.subr.mxu0 %v1756_v2 }
 0x72b   :  { %1598 = vmatpush3.msra.mxu0 %v1920_v41 }
 0x72c   :  { %1599 = vmatprep.subr.mxu0 %v1756_v2 }
 0x72d   :  { %1600 = vmatpush3.msra.mxu0 %v1927_v43 }
 0x72e   :  { %1601 = vmatprep.subr.mxu0 %v1756_v2 }
 0x72f   :  { %1602 = vmatpush3.msra.mxu0 %v1934_v44 }
 0x7d0   :  { %v798_v18 = vpop.f32.mrf.mxu0 }
 0x7d1   :  { %v802_v21 = vadd.f32 %v798_v18, %v253_v15 }
 0x7d2   :  { %v1535_v23 = vpop.f32.mrf.mxu0 }
 0x7d3   :  { %1672 = vtanh.f32 %v802_v21 }
 0x7e0   :  { %v1673_v25 = vpop.eup %1672 }
 0x7e1   :  { %v804_v27 = vmul.f32 %v1673_v25, %v1829_v12 }
 0x7e3   :  { %v805_v29 = vadd.f32 %v804_v27, %v1999_v54 }
 0x7e5   :  { %808 = vrot.lane.b32.xlu0 %v805_v29, %s1761_s10  ;;  %806 = vrot.lane.b32.xlu1 %v805_v29, %s1760_s7 }
 0x7e9   :  { %810 = vrot.lane.b32.xlu1 %v805_v29, %s1759_s30 }
 0x857   :  { %v809_v31 = vpop.permute.xlu0 %808  ;;  %v807_v33 = vpop.permute.xlu1 %806 }
 0x858   :  { %v813_v35 = vmul.f32 %v809_v31, %v805_v29  ;;  %v812_v37 = vmul.f32 %v807_v33, %v727_v51 }
 0x85a   :  { %v814_v39 = vadd.f32 %v813_v35, %v812_v37 }
 0x85b   :  { %v811_v43 = vpop.permute.xlu1 %810 }
 0x85c   :  { %1674 = vtanh.f32 %v814_v39 }
 0x869   :  { %v1675_v41 = vpop.eup %1674 }
 0x86a   :  { %v816_v44 = vmul.f32 %v1675_v41, %v811_v43 }
 0x86c   :  { %1569 = vmatmul.mubr.f32.vlgmr.msra.gmra.mxu1 %v816_v44 }
 0x92c   :  { %v885_v57 = vpop.f32.mrf.mxu1 }
 0x92d   :  { %v889_v58 = vadd.f32 %v885_v57, %v254_v56 }
 0x92e   :  { %v1570_v59 = vpop.f32.mrf.mxu1 }
 0x92f   :  { %1676 = vtanh.f32 %v889_v58 }
 0x93c   :  { %v1677_v60 = vpop.eup %1676 }
 0x93d   :  { %v891_v61 = vmul.f32 %v1677_v60, %v1829_v12 }
 0x93f   :  { %v892_v62 = vadd.f32 %v891_v61, %v1999_v54 }
 0x941   :  { %895 = vrot.lane.b32.xlu1 %v892_v62, %s1761_s10  ;;  %893 = vrot.lane.b32.xlu0 %v892_v62, %s1760_s7 }
 0x945   :  { %897 = vrot.lane.b32.xlu0 %v892_v62, %s1759_s30 }
 0x9b3   :  { %v896_v63 = vpop.permute.xlu1 %895  ;;  %v894_v0 = vpop.permute.xlu0 %893 }
 0x9b4   :  { %v900_v17 = vmul.f32 %v896_v63, %v892_v62  ;;  %v899_v1 = vmul.f32 %v894_v0, %v814_v39 }
 0x9b6   :  { %v901_v3 = vadd.f32 %v900_v17, %v899_v1 }
 0x9b7   :  { %v898_v5 = vpop.permute.xlu0 %897 }
 0x9b8   :  { %1678 = vtanh.f32 %v901_v3 }
 0x9c5   :  { %v1679_v4 = vpop.eup %1678 }
 0x9c6   :  { %v903_v6 = vmul.f32 %v1679_v4, %v898_v5 }
 0x9c8   :  { %1604 = vmatmul.mubr.f32.vlgmr.msra.gmra.mxu0 %v903_v6 }
 0xa88   :  { %v972_v16 = vpop.f32.mrf.mxu0 }
 0xa89   :  { %v976_v19 = vadd.f32 %v972_v16, %v255_v9 }
 0xa8a   :  { %v1605_v20 = vpop.f32.mrf.mxu0 }
 0xa8b   :  { %1680 = vtanh.f32 %v976_v19 }
 0xa98   :  { %v1681_v8 = vpop.eup %1680 }
 0xa99   :  { %v978_v22 = vmul.f32 %v1681_v8, %v1829_v12 }
 0xa9b   :  { %v979_v24 = vadd.f32 %v978_v22, %v1999_v54 }
 0xa9d   :  { %982 = vrot.lane.b32.xlu0 %v979_v24, %s1761_s10  ;;  %980 = vrot.lane.b32.xlu1 %v979_v24, %s1760_s7 }
 0xaa1   :  { %984 = vrot.lane.b32.xlu1 %v979_v24, %s1759_s30 }
 0xb0f   :  { %v983_v26 = vpop.permute.xlu0 %982  ;;  %v981_v28 = vpop.permute.xlu1 %980 }
 0xb10   :  { %v987_v46 = vmul.f32 %v983_v26, %v979_v24  ;;  %v986_v13 = vmul.f32 %v981_v28, %v901_v3 }
 0xb12   :  { %v988_v30 = vadd.f32 %v987_v46, %v986_v13 }
 0xb13   :  { %v985_v34 = vpop.permute.xlu1 %984 }
 0xb14   :  { %1682 = vtanh.f32 %v988_v30 }
 0xb21   :  { %v1683_v32 = vpop.eup %1682 }
 0xb22   :  { %v990_v36 = vmul.f32 %v1683_v32, %v985_v34 }
 0xb23   :  { %1746 = dma.done.wait [#allocation5], 2048 }
 0xb24   :  { %1747 = vsyncadd [#allocation5], 4294965248 }
 0xb25   :  { %1748 = dma.done.wait [#allocation5 + $0x1], 16 }
 0xb26   :  { %1749 = vsyncadd [#allocation5 + $0x1], 4294967280  ;;  %1606 = vmatprep.subr.mxu1 %v1756_v2  ;;  %1638 = vmatprep.mubr.msk.f32.mxu1 %vm1757_vm0, %v1756_v2  ;;  %v1012_v12 = vld [vmem:[#allocation3 + $0x78] sm:$0xff]  ;;  %v1011_v54 = vld [vmem:[#allocation3 + $0x70] sm:$0xff]  ;;  %s1762_s0 = smov [#allocation9]  }
 0xb27   :  { %1607 = vmatpush3.msra.mxu1 %v1012_v12  ;;  %v1010_v38 = vld [vmem:[#allocation3 + $0x68] sm:$0xff]  ;;  %v1009_v40 = vld [vmem:[#allocation3 + $0x60] sm:$0xff]  ;;  %v1008_v42 = vld [vmem:[#allocation3 + $0x58] sm:$0xff]  ;;  %s1097_s2 = sshll.u32 %s1762_s0, 4  ;;  %s1098_s2 = int_to_ptr.vmem [resolvable:$true] %s1097_s2 }
 0xb28   :  { %1608 = vmatprep.subr.mxu1 %v1756_v2  ;;  %v1007_v45 = vld [vmem:[#allocation3 + $0x50] sm:$0xff]  ;;  %v1006_v47 = vld [vmem:[#allocation3 + $0x48] sm:$0xff]  ;;  %v1005_v48 = vld [vmem:[#allocation3 + $0x40] sm:$0xff]  ;;  %s1724_s11 = scalar_lea.vmem %s1098_s2, 128  ;;  %p1729_p11 = scmp.lt.s32.totalorder %s1098_s2, %s1098_s2 }
 0xb29   :  { %1609 = vmatpush3.msra.mxu1 %v1011_v54  ;;  %v1004_v49 = vld [vmem:[#allocation3 + $0x38] sm:$0xff]  ;;  %v1003_v11 = vld [vmem:[#allocation3 + $0x30] sm:$0xff]  ;;  %v1002_v50 = vld [vmem:[#allocation3 + $0x28] sm:$0xff]  ;;  %p1725_p10 = scmp.ne.s32.totalorder %s1098_s2, %s1724_s11  ;;  %p1730_p12 = scmp.lt.s32.totalorder %s1724_s11, %s1724_s11 }
 0xb2a   :  { %1610 = vmatprep.subr.mxu1 %v1756_v2  ;;  %v1001_v51 = vld [vmem:[#allocation3 + $0x20] sm:$0xff]  ;;  %v1000_v52 = vld [vmem:[#allocation3 + $0x18] sm:$0xff]  ;;  %v999_v53 = vld [vmem:[#allocation3 + $0x10] sm:$0xff] }
 0xb2b   :  { %1611 = vmatpush3.msra.mxu1 %v1010_v38  ;;  %v998_v55 = vld [vmem:[#allocation3 + $0x8] sm:$0xff]  ;;  %v997_v14 = vld [vmem:[#allocation3] sm:$0xff]  ;;  %p1731_p13 = por %p1730_p12, %p1729_p11 }
 0xb2c   :  { %1612 = vmatprep.subr.mxu1 %v1756_v2  ;;  %v1138_v15 = vld [vmem:[#allocation4] ss:$0 sm:$0xff] }
 0xb2d   :  { %1613 = vmatpush3.msra.mxu1 %v1009_v40  ;;  %p1732_p0 = pnand %p1731_p13, %p1725_p10 }
 0xb2e   :  { %1614 = vmatprep.subr.mxu1 %v1756_v2 }
 0xb2f   :  { %1615 = vmatpush3.msra.mxu1 %v1008_v42 }
 0xb30   :  { %1616 = vmatprep.subr.mxu1 %v1756_v2 }
 0xb31   :  { %1617 = vmatpush3.msra.mxu1 %v1007_v45 }
 0xb32   :  { %1618 = vmatprep.subr.mxu1 %v1756_v2 }
 0xb33   :  { %1619 = vmatpush3.msra.mxu1 %v1006_v47 }
 0xb34   :  { %1620 = vmatprep.subr.mxu1 %v1756_v2 }
 0xb35   :  { %1621 = vmatpush3.msra.mxu1 %v1005_v48 }
 0xb36   :  { %1622 = vmatprep.subr.mxu1 %v1756_v2 }
 0xb37   :  { %1623 = vmatpush3.msra.mxu1 %v1004_v49 }
 0xb38   :  { %1624 = vmatprep.subr.mxu1 %v1756_v2 }
 0xb39   :  { %1625 = vmatpush3.msra.mxu1 %v1003_v11 }
 0xb3a   :  { %1626 = vmatprep.subr.mxu1 %v1756_v2 }
 0xb3b   :  { %1627 = vmatpush3.msra.mxu1 %v1002_v50 }
 0xb3c   :  { %1628 = vmatprep.subr.mxu1 %v1756_v2 }
 0xb3d   :  { %1629 = vmatpush3.msra.mxu1 %v1001_v51 }
 0xb3e   :  { %1630 = vmatprep.subr.mxu1 %v1756_v2 }
 0xb3f   :  { %1631 = vmatpush3.msra.mxu1 %v1000_v52 }
 0xb40   :  { %1632 = vmatprep.subr.mxu1 %v1756_v2 }
 0xb41   :  { %1633 = vmatpush3.msra.mxu1 %v999_v53 }
 0xb42   :  { %1634 = vmatprep.subr.mxu1 %v1756_v2 }
 0xb43   :  { %1635 = vmatpush3.msra.mxu1 %v998_v55 }
 0xb44   :  { %1636 = vmatprep.subr.mxu1 %v1756_v2 }
 0xb45   :  { %1637 = vmatpush3.msra.mxu1 %v997_v14 }
 0xb46   :  { %1639 = vmatmul.mubr.f32.vlgmr.msra.gmra.mxu1 %v990_v36 }
 0xc06   :  { %v1086_v18 = vpop.f32.mrf.mxu1 }
 0xc07   :  { %v1087_v21 = vadd.f32 %v1138_v15, %v1086_v18 }
 0xc08   :  { %v1640_v23 = vpop.f32.mrf.mxu1 }
 0xc09   :  { %1090 = vst [vmem:[#allocation9] sm:$0xff] %v1087_v21 }
 0xc0a   :  { %1735 = shalt.err (!%p1732_p0)
}
 0xc0b   :  { %1100 = dma.vmem_to_hbm [thread:$0]  %s1098_s2, 128, %s2292_s6, [#allocation8]  }
 0xc0c   :  { %1750 = dma.done.wait [#allocation8], 128  }
 0xc0d   :  { %1751 = vsyncadd [#allocation8], 4294967168 }
 0xc0e   :  { %1104 = vsyncpa [#allocation7], 1 }
 0xc0f   :  { %1105 = vsyncpa [#allocation8], 1 }
 0xc10   :  { %1106 = vsyncmov [#allocation5] }
 0xc13   :  { %s1107_s5 = vpop.sfrf %1106 }
 0xc14   :  { %p1139_p1 = scmp.ne.s32.totalorder %s1107_s5, 0 }
 0xc16   :  { %1111 = shalt.err (%p1139_p1)  }
 0xc17   :  { %1113 = vsyncmov [#allocation5 + $0x1] }
 0xc1a   :  { %s1114_s13 = vpop.sfrf %1113 }
 0xc1b   :  { %p1140_p2 = scmp.ne.s32.totalorder %s1114_s13, 0 }
 0xc1d   :  { %1118 = shalt.err (%p1140_p2)  }

</bundles_post_ra>
